<compile_context>
chip_gen: v7x
topology: tpu7x:2x2x1
jax: 0.10.0
libtpu: 0.0.40
codegen_flags: <defaults>
</compile_context>

<pallas_src>
import jax
import jax.numpy as jnp
from jax.experimental import pallas as pl
from jax.experimental.pallas import tpu as pltpu


def _head_kernel(x_ref, w2_ref, b2_ref, o_ref):
    # x_ref: (TILE_B, D) VMEM (stored dtype) | w2_ref: (1, D) VMEM | b2_ref: (1,) SMEM f32
    x = x_ref[...].astype(jnp.float32)       # cast after load; DMA stays narrow
    w2 = w2_ref[...].astype(jnp.float32)     # (1, D) row, sublane-broadcast
    # linear2 applied to x (exactly as in the reference forward):
    # VPU elementwise multiply + XLU lane reduction -> (TILE_B, 1).
    z = jnp.sum(x * w2, axis=-1, keepdims=True) + b2_ref[0]
    # sigmoid(z) = 0.5 * (tanh(z/2) + 1): EUP tanh saturates, so no overflow
    # and no divide / approx-reciprocal error.
    o_ref[...] = (0.5 * (jnp.tanh(0.5 * z) + 1.0)).astype(o_ref.dtype)


def _pick_tile_b(B, D, itemsize):
    """Batch tile sized from a VMEM byte budget, not a fixed cap.

    Target ~4 MiB per x buffer (double-buffered ~8 MiB), which amortizes the
    ~0.35 us per-grid-step overhead and fits the default scoped VMEM on
    v5e/v6e/v7x without raising vmem_limit_bytes. For B >= 256 we force at
    least two grid steps so the megacore/v7x dual-TC sharding has work.
    """
    target_bytes = 4 * 1024 * 1024
    budget = max(((target_bytes // max(D * itemsize, 1)) // 128) * 128, 128)
    if B < 256:
        return B                      # one full-dim tile; too small to split
    half = -(-B // 2)                 # ceil(B / 2)
    half = -(-half // 128) * 128      # round up to a multiple of 128
    return min(half, budget)


def neural_network_forward(x, w1, b1, w2, b2):
    """x: [B, D]; w1: [H, D]; b1: [H]; w2: [1, H]; b2: [1] (PyTorch Linear layout).

    w1/b1 are accepted to mirror the module's parameters, but they are provably
    dead in the reference forward (its output is sigmoid(linear2(x))), so no
    kernel work is emitted for them.
    """
    B, D = x.shape
    H = w1.shape[0]
    del b1  # dead parameter (linear1 output is overwritten in the reference)
    assert D == H, "reference forward requires input_size == hidden_size (linear2(x))"

    w2_row = w2.reshape(1, H)                     # (1, D) row, resident in VMEM
    b2_s = b2.astype(jnp.float32).reshape((1,))   # scalar, lives in SMEM

    TILE_B = _pick_tile_b(B, D, jnp.dtype(x.dtype).itemsize)
    grid = (pl.cdiv(B, TILE_B),)

    out = pl.pallas_call(
        _head_kernel,
        out_shape=jax.ShapeDtypeStruct((B, 1), x.dtype),
        grid=grid,
        in_specs=[
            pl.BlockSpec((TILE_B, D), lambda i: (i, 0)),        # x in natural layout
            pl.BlockSpec((1, D), lambda i: (0, 0)),             # w2 row (resident)
            pl.BlockSpec(memory_space=pltpu.MemorySpace.SMEM),  # b2 scalar
        ],
        out_specs=pl.BlockSpec((TILE_B, 1), lambda i: (i, 0)),
        compiler_params=pltpu.CompilerParams(
            dimension_semantics=("parallel",)),
    )(x, w2_row, b2_s)

    return out  # already [B, 1], matching the PyTorch module


def _make_params(key, D, H):
    k1, k2, k3, k4 = jax.random.split(key, 4)
    bound1 = 1.0 / float(D) ** 0.5
    w1 = jax.random.uniform(k1, (H, D), jnp.float32, -bound1, bound1)
    b1 = jax.random.uniform(k2, (H,), jnp.float32, -bound1, bound1)
    bound2 = 1.0 / float(H) ** 0.5
    w2 = jax.random.uniform(k3, (1, H), jnp.float32, -bound2, bound2)
    b2 = jax.random.uniform(k4, (1,), jnp.float32, -bound2, bound2)
    return w1, b1, w2, b2


if __name__ == "__main__":
    # Small shapes consistent with the module: input_size == hidden_size == 32.
    D = H = 32
    key = jax.random.PRNGKey(0)
    kx1, kx2, kp = jax.random.split(key, 3)
    w1, b1, w2, b2 = _make_params(kp, D, H)

    def literal_ref(x):
        # Pure-JAX reference of the same (literal) forward: sigmoid(linear2(x)).
        return jax.nn.sigmoid(x @ w2.T + b2)

    # Case 1: tiny batch (single full-dim tile).
    x1 = jax.random.normal(kx1, (8, D), dtype=jnp.float32)
    out1 = jax.block_until_ready(neural_network_forward(x1, w1, b1, w2, b2))
    assert out1.shape == (8, 1)
    assert jnp.allclose(out1, literal_ref(x1), atol=1e-4, rtol=1e-4), \
        float(jnp.max(jnp.abs(out1 - literal_ref(x1))))

    # Case 2: batch not a multiple of the tile -> exercises the trailing
    # partial block and the >=2-step parallel grid (v7x dual-TC path).
    x2 = jax.random.normal(kx2, (384, D), dtype=jnp.float32)
    out2 = jax.block_until_ready(neural_network_forward(x2, w1, b1, w2, b2))
    assert out2.shape == (384, 1)
    assert jnp.allclose(out2, literal_ref(x2), atol=1e-4, rtol=1e-4), \
        float(jnp.max(jnp.abs(out2 - literal_ref(x2))))

    print("KERNEL_OK")
</pallas_src>

<mosaic_0001>
module attributes {stable_mosaic.version = 11 : i64} {
  func.func @_head_kernel(%arg0: i32, %arg1: memref<8x32xf32, #tpu.memory_space<vmem>>, %arg2: memref<1x32xf32, #tpu.memory_space<vmem>>, %arg3: memref<1xf32, #tpu.memory_space<smem>>, %arg4: memref<8x1xf32, #tpu.memory_space<vmem>>) attributes {dimension_semantics = [#tpu.dimension_semantics<parallel>], iteration_bounds = array<i64: 1>, scalar_prefetch = 0 : i64, scratch_operands = 0 : i64, tpu.core_type = #tpu.core_type<tc>, window_params = [{transform_indices = @transform_0, window_bounds = array<i64: 8, 32>}, {pipeline_mode = #tpu.pipeline_mode<synchronous>, transform_indices = @transform_1, window_bounds = array<i64: 1, 32>}, {transform_indices = @transform_2, window_bounds = array<i64: 1>}, {transform_indices = @transform_3, window_bounds = array<i64: 8, 1>}]} {
    %c0 = arith.constant 0 : index
    %c0_0 = arith.constant 0 : index
    %0 = vector.load %arg1[%c0, %c0_0] : memref<8x32xf32, #tpu.memory_space<vmem>>, vector<8x32xf32>
    %c0_1 = arith.constant 0 : index
    %c0_2 = arith.constant 0 : index
    %1 = vector.load %arg2[%c0_1, %c0_2] : memref<1x32xf32, #tpu.memory_space<vmem>>, vector<1x32xf32>
    %2 = vector.broadcast %1 : vector<1x32xf32> to vector<8x32xf32>
    %3 = arith.mulf %0, %2 : vector<8x32xf32>
    %cst = arith.constant dense<0.000000e+00> : vector<8xf32>
    %4 = vector.multi_reduction <add>, %3, %cst [1] : vector<8x32xf32> to vector<8xf32>
    %5 = vector.shape_cast %4 : vector<8xf32> to vector<8x1xf32>
    %c0_3 = arith.constant 0 : index
    %6 = memref.load %arg3[%c0_3] : memref<1xf32, #tpu.memory_space<smem>>
    %7 = vector.broadcast %6 : f32 to vector<8x1xf32>
    %8 = arith.addf %5, %7 : vector<8x1xf32>
    %cst_4 = arith.constant 5.000000e-01 : f32
    %9 = vector.broadcast %cst_4 : f32 to vector<8x1xf32>
    %10 = arith.mulf %9, %8 : vector<8x1xf32>
    %11 = math.tanh %10 : vector<8x1xf32>
    %cst_5 = arith.constant 1.000000e+00 : f32
    %12 = vector.broadcast %cst_5 : f32 to vector<8x1xf32>
    %13 = arith.addf %11, %12 : vector<8x1xf32>
    %cst_6 = arith.constant 5.000000e-01 : f32
    %14 = vector.broadcast %cst_6 : f32 to vector<8x1xf32>
    %15 = arith.mulf %14, %13 : vector<8x1xf32>
    %c0_7 = arith.constant 0 : index
    %c0_8 = arith.constant 0 : index
    %16 = vector.load %arg4[%c0_7, %c0_8] : memref<8x1xf32, #tpu.memory_space<vmem>>, vector<8x1xf32>
    tpu.vector_store %arg4[%c0_7, %c0_8], %15 {strides = array<i32>} : memref<8x1xf32, #tpu.memory_space<vmem>>, vector<8x1xf32>,
    return
  }
  func.func @transform_0(%arg0: i32) -> (i32, i32) {
    %c0_i32 = arith.constant 0 : i32
    %c0_i32_0 = arith.constant 0 : i32
    return %arg0, %c0_i32 : i32, i32
  }
  func.func @transform_1(%arg0: i32) -> (i32, i32) {
    %c0_i32 = arith.constant 0 : i32
    %c0_i32_0 = arith.constant 0 : i32
    %c0_i32_1 = arith.constant 0 : i32
    return %c0_i32, %c0_i32_0 : i32, i32
  }
  func.func @transform_2(%arg0: i32) -> i32 {
    %c0_i32 = arith.constant 0 : i32
    %c0_i32_0 = arith.constant 0 : i32
    return %c0_i32 : i32
  }
  func.func @transform_3(%arg0: i32) -> (i32, i32) {
    %c0_i32 = arith.constant 0 : i32
    %c0_i32_0 = arith.constant 0 : i32
    return %arg0, %c0_i32 : i32, i32
  }
}

</mosaic_0001>

<bundles_post_ra>
// kernel: tpu_custom_call.1
= control target key start
LH: loop header
LB: loop body
LE: loop exit
PB: predicated region body
PF: predicated region fallthrough
CT: control target
= control target key end

     0   :  { %9 = vsyncpa [#allocation4], 0  ;;  %s82_s12 = smov [#allocation3]   ;;  %s124_s0 = inlined_call_operand.hbm [shape: f32[8,32], index: 0, kind: input, shape index: {}]   ;;  %s125_s1 = inlined_call_operand.vmem [shape: f32[1,32], index: 1, kind: input, shape index: {}]   ;;  %s126_s2 = inlined_call_operand.<no memory space> [shape: f32[1], index: 2, kind: input, shape index: {}]   ;;  %s127_s3 = inlined_call_operand.vmem [shape: f32[8,1], index: 3, kind: output, shape index: {}]  }
   0x1   :  { %s16_s13 = sshll.u32 %s82_s12, 4  ;;  %s58_s16 = scalar_lea.hbm %s124_s0, 128  ;;  %s17_s13 = int_to_ptr.vmem [resolvable:$true] %s16_s13 }
   0x2   :  { %p59_p0 = scmp.ne.s32.totalorder %s124_s0, %s58_s16  ;;  %p62_p1 = scmp.lt.u32.totalorder %s58_s16, %s124_s0 }
   0x4   :  { %p64_p2 = pnand %p62_p1, %p59_p0 }
   0x6   :  { %67 = shalt.err (!%p64_p2)
}
   0x7   :  { %s68_s21 = scalar_lea.vmem %s17_s13, 128  ;;  %p73_p4 = scmp.lt.s32.totalorder %s17_s13, %s17_s13 }
   0x8   :  { %p69_p3 = scmp.ne.s32.totalorder %s17_s13, %s68_s21  ;;  %p74_p5 = scmp.lt.s32.totalorder %s68_s21, %s68_s21 }
   0xa   :  { %p75_p6 = por %p74_p5, %p73_p4 }
   0xc   :  { %p76_p7 = pnand %p75_p6, %p69_p3 }
   0xe   :  { %79 = shalt.err (!%p76_p7)
}
   0xf   :  { %19 = dma.hbm_to_vmem [thread:$0]  %s124_s0, 128, %s17_s13, [#allocation4]  }
  0x10   :  { %80 = dma.done.wait [#allocation4], 128  }
  0x11   :  { %81 = vsyncadd [#allocation4], 4294967168  ;;  %v27_v0 = vld [vmem:[#allocation3] sm:$0xff]  ;;  %vm36_vm0 = vcmask 261120   ;;  %v41_v4 = vstv %s126_s2  ;;  %vm47_vm1 = vcmask 7168  }
  0x12   :  { %v54_v1 = vld [vmem:[%s125_s1] ss:$0 sm:$0xff] }
  0x13   :  { %v35_v2 = vmul.f32 %v54_v1, %v27_v0 }
  0x15   :  { %v37_v3 = vsel %vm36_vm0, %v35_v2, 0.0 }
  0x16   :  { %38 = vadd.xlane.f32.xlu0 %v37_v3 }
  0xa3   :  { %v39_v5 = vpop.xlane.xlu0 %38 }
  0xa4   :  { %v42_v6 = vadd.f32 %v41_v4, %v39_v5 }
  0xa6   :  { %v43_v7 = vmul.f32 0.5, %v42_v6 }
  0xa8   :  { %56 = vtanh.f32 %v43_v7 }
  0xb2   :  { %v57_v8 = vpop.eup %56 }
  0xb3   :  { %v45_v9 = vadd.f32 1.0, %v57_v8 }
  0xb5   :  { %v46_v10 = vmul.f32 0.5, %v45_v9 }
  0xb7   :  { %48 = vst.msk [vmem:[%s127_s3] sm:$0xff] %vm47_vm1, %v46_v10 }
  0xb8   :  { %53 = vsyncpa [#allocation4], 1 }

</bundles_post_ra>
